<compile_context>
chip_gen: v5e
topology: v5e:2x2
jax: 0.10.0
libtpu: 0.0.40
codegen_flags: <defaults>
</compile_context>

<pallas_src>
import jax
import jax.numpy as jnp
from jax.experimental import pallas as pl
from jax.experimental.pallas import tpu as pltpu


# --------------------------------------------------------------------------- #
# Kernel
# --------------------------------------------------------------------------- #
def _fcv_kernel(x_ref, w_ref, b_ref, o_ref):
    # x_ref: (TM, C) VMEM | w_ref: (1, C) VMEM | b_ref: (1,) f32 SMEM
    # o_ref: (TM, 1) VMEM
    x = x_ref[...]
    w = w_ref[...]
    if x.dtype != jnp.bfloat16:
        # f32 (or anything else): multiply in f32.  bf16 stays bf16 for the
        # multiply (v6e/v7x bf16 VPU; v5e legalizes via upcast automatically).
        x = x.astype(jnp.float32)
        w = w.astype(jnp.float32)
    prod = x * w                                   # VPU; (1, C) broadcasts over rows
    # XLU lane reduce with f32 accumulation -> (TM, 1).
    s = jnp.sum(prod, axis=-1, keepdims=True, dtype=jnp.float32)
    o_ref[...] = (s + b_ref[0]).astype(o_ref.dtype)


# --------------------------------------------------------------------------- #
# Tiling / VMEM budgeting
# --------------------------------------------------------------------------- #
def _round_up(n, m):
    return ((n + m - 1) // m) * m


def _vmem_limit_bytes():
    """Per-generation VMEM limit: ~2/3 of physical (85 MiB on v5e/v6e 128 MiB,
    ~42 MiB on v7x 64 MiB).  Falls back to the v7x-safe assumption."""
    phys = 64 * 1024 * 1024
    try:
        phys = int(pltpu.get_tpu_info().vmem_capacity_bytes)
    except Exception:
        pass
    return (phys * 2) // 3


def _pick_block_rows(n_rows, n_cols, x_dtype, out_dtype, vmem_limit):
    """Largest 8-row-aligned batch tile whose *lane-padded* double-buffered
    footprint (x tile + (tm,1) out block + weight + headroom) fits the limit."""
    pad_c = _round_up(max(n_cols, 1), 128)          # minor dim pads to 128 lanes
    x_isz = jnp.dtype(x_dtype).itemsize
    o_isz = jnp.dtype(out_dtype).itemsize

    headroom = 2 * 1024 * 1024
    weight_bufs = 2 * 8 * pad_c * 4                 # 2 sublane+lane-padded weight buffers
    budget = vmem_limit - headroom - weight_bufs

    # Per-row footprint: double-buffered x rows + double-buffered (tm, 1) out
    # rows (out minor dim also pads to 128 lanes in VMEM).
    bytes_per_row = 2 * pad_c * x_isz + 2 * 128 * o_isz
    budget = max(budget, 8 * bytes_per_row)         # never below an 8-row tile

    rows = budget // bytes_per_row
    rows = max(8, (rows // 8) * 8)

    # For very large batches keep >= ~8 grid steps (v7x: 2 TCs each need
    # several tiles to overlap), but never shrink a tile below 4096 rows.
    if n_rows >= 8 * 4096:
        rows = min(rows, max(4096, ((n_rows // 8) // 8) * 8))

    rows = min(rows, _round_up(n_rows, 8))
    return max(8, rows)


# --------------------------------------------------------------------------- #
# pallas_call wrapper
# --------------------------------------------------------------------------- #
def _fcv_forward_pallas(x, weight, bias, *, block_rows=None):
    """x: (B, C); weight: (1, C) (nn.Linear layout); bias: (1,)."""
    B, C = x.shape
    vmem_limit = _vmem_limit_bytes()

    if block_rows is None:
        tm = _pick_block_rows(B, C, x.dtype, x.dtype, vmem_limit)
    else:
        tm = max(8, (block_rows // 8) * 8)
    grid = (pl.cdiv(B, tm),)   # partial last block handled by masked writeback

    weight2 = weight.reshape(1, C)
    bias1 = bias.reshape(1).astype(jnp.float32)      # f32 scalar for SMEM

    cost = pl.CostEstimate(
        flops=2 * B * C,
        transcendentals=0,
        bytes_accessed=int(x.size) * int(jnp.dtype(x.dtype).itemsize)
        + int(weight2.size) * int(jnp.dtype(weight2.dtype).itemsize)
        + 4
        + B * int(jnp.dtype(x.dtype).itemsize),
    )

    return pl.pallas_call(
        _fcv_kernel,
        out_shape=jax.ShapeDtypeStruct((B, 1), x.dtype),
        grid_spec=pltpu.PrefetchScalarGridSpec(
            num_scalar_prefetch=0,
            grid=grid,
            in_specs=[
                pl.BlockSpec((tm, C), lambda i: (i, 0)),            # streamed batch tile
                pl.BlockSpec((1, C), lambda i: (0, 0)),             # resident lane-dense weight
                pl.BlockSpec(memory_space=pltpu.MemorySpace.SMEM),  # scalar bias
            ],
            out_specs=pl.BlockSpec((tm, 1), lambda i: (i, 0)),
        ),
        compiler_params=pltpu.CompilerParams(
            dimension_semantics=("parallel",),        # split batch tiles across TCs (v7x)
            vmem_limit_bytes=vmem_limit,
        ),
        cost_estimate=cost,
    )(x, weight2, bias1)


# Below this, dispatch + single-step pallas_call overhead beats the fused XLA
# GEMV on every generation (crossover per review is ~1-4M elements).
_MIN_PALLAS_ELEMS = 1 << 21


def fcv_forward(state, weight, bias, *, block_rows=None, force_pallas=False):
    """PyTorch semantics: y = state @ weight.T + bias on the last dim."""
    C = state.shape[-1]
    lead = state.shape[:-1]
    x2 = state.reshape(-1, C)
    if not force_pallas and x2.shape[0] * C < _MIN_PALLAS_ELEMS:
        out = x2 @ weight.reshape(1, C).T + bias.reshape(1)   # tiny: let XLA fuse it
    else:
        out = _fcv_forward_pallas(x2, weight, bias, block_rows=block_rows)
    return out.reshape(*lead, 1)


# --------------------------------------------------------------------------- #
# Demo / correctness check
# --------------------------------------------------------------------------- #
if __name__ == "__main__":
    n_input_channels = 48
    batch = 20   # not a multiple of the 8-row tile -> exercises masked boundary block

    key = jax.random.PRNGKey(0)
    kx, kw, kb = jax.random.split(key, 3)

    # Deterministic init mimicking nn.Linear's default (uniform +/- 1/sqrt(fan_in)).
    bound = 1.0 / (n_input_channels ** 0.5)
    weight = jax.random.uniform(kw, (1, n_input_channels), jnp.float32, -bound, bound)
    bias = jax.random.uniform(kb, (1,), jnp.float32, -bound, bound)
    state = jax.random.normal(kx, (batch, n_input_channels), jnp.float32)

    # Force the Pallas path with an 8-row tile so the demo runs a real 3-step grid.
    out = fcv_forward(state, weight, bias, block_rows=8, force_pallas=True)
    jax.block_until_ready(out)

    # Also exercise the auto-sized tile path once (single-tile grid here).
    out_auto = fcv_forward(state, weight, bias, force_pallas=True)
    jax.block_until_ready(out_auto)

    # Reference check against plain JAX (same math as PyTorch nn.Linear).
    ref = state @ weight.T + bias
    assert out.shape == (batch, 1)
    assert jnp.allclose(out, ref, atol=1e-5, rtol=1e-5)
    assert jnp.allclose(out_auto, ref, atol=1e-5, rtol=1e-5)

    print("KERNEL_OK")
</pallas_src>

<mosaic_0001>
module attributes {stable_mosaic.version = 11 : i64} {
  func.func @_fcv_kernel(%arg0: i32, %arg1: memref<8x48xf32, #tpu.memory_space<vmem>>, %arg2: memref<1x48xf32, #tpu.memory_space<vmem>>, %arg3: memref<1xf32, #tpu.memory_space<smem>>, %arg4: memref<8x1xf32, #tpu.memory_space<vmem>>) attributes {dimension_semantics = [#tpu.dimension_semantics<parallel>], iteration_bounds = array<i64: 3>, scalar_prefetch = 0 : i64, scratch_operands = 0 : i64, tpu.core_type = #tpu.core_type<tc>, window_params = [{transform_indices = @transform_0, window_bounds = array<i64: 8, 48>}, {pipeline_mode = #tpu.pipeline_mode<synchronous>, transform_indices = @transform_1, window_bounds = array<i64: 1, 48>}, {transform_indices = @transform_2, window_bounds = array<i64: 1>}, {transform_indices = @transform_3, window_bounds = array<i64: 8, 1>}]} {
    %c0 = arith.constant 0 : index
    %c0_0 = arith.constant 0 : index
    %0 = vector.load %arg1[%c0, %c0_0] : memref<8x48xf32, #tpu.memory_space<vmem>>, vector<8x48xf32>
    %c0_1 = arith.constant 0 : index
    %c0_2 = arith.constant 0 : index
    %1 = vector.load %arg2[%c0_1, %c0_2] : memref<1x48xf32, #tpu.memory_space<vmem>>, vector<1x48xf32>
    %2 = vector.broadcast %1 : vector<1x48xf32> to vector<8x48xf32>
    %3 = arith.mulf %0, %2 : vector<8x48xf32>
    %cst = arith.constant dense<0.000000e+00> : vector<8xf32>
    %4 = vector.multi_reduction <add>, %3, %cst [1] : vector<8x48xf32> to vector<8xf32>
    %5 = vector.shape_cast %4 : vector<8xf32> to vector<8x1xf32>
    %c0_3 = arith.constant 0 : index
    %6 = memref.load %arg3[%c0_3] : memref<1xf32, #tpu.memory_space<smem>>
    %7 = vector.broadcast %6 : f32 to vector<8x1xf32>
    %8 = arith.addf %5, %7 : vector<8x1xf32>
    %c0_4 = arith.constant 0 : index
    %c0_5 = arith.constant 0 : index
    %9 = vector.load %arg4[%c0_4, %c0_5] : memref<8x1xf32, #tpu.memory_space<vmem>>, vector<8x1xf32>
    tpu.vector_store %arg4[%c0_4, %c0_5], %8 {strides = array<i32>} : memref<8x1xf32, #tpu.memory_space<vmem>>, vector<8x1xf32>,
    return
  }
  func.func @transform_0(%arg0: i32) -> (i32, i32) {
    %c0_i32 = arith.constant 0 : i32
    %c0_i32_0 = arith.constant 0 : i32
    return %arg0, %c0_i32 : i32, i32
  }
  func.func @transform_1(%arg0: i32) -> (i32, i32) {
    %c0_i32 = arith.constant 0 : i32
    %c0_i32_0 = arith.constant 0 : i32
    %c0_i32_1 = arith.constant 0 : i32
    return %c0_i32, %c0_i32_0 : i32, i32
  }
  func.func @transform_2(%arg0: i32) -> i32 {
    %c0_i32 = arith.constant 0 : i32
    %c0_i32_0 = arith.constant 0 : i32
    return %c0_i32 : i32
  }
  func.func @transform_3(%arg0: i32) -> (i32, i32) {
    %c0_i32 = arith.constant 0 : i32
    %c0_i32_0 = arith.constant 0 : i32
    return %arg0, %c0_i32 : i32, i32
  }
}

</mosaic_0001>

<bundles_post_ra>
// kernel: tpu_custom_call.1
= control target key start
LH: loop header
LB: loop body
LE: loop exit
PB: predicated region body
PF: predicated region fallthrough
CT: control target
= control target key end

     0   :  { %s505_s0 = inlined_call_operand.hbm [shape: f32[20,48], index: 0, kind: input, shape index: {}]   ;;  %s506_s1 = inlined_call_operand.vmem [shape: f32[1,48], index: 1, kind: input, shape index: {}]   ;;  %s507_s2 = inlined_call_operand.<no memory space> [shape: f32[1], index: 2, kind: input, shape index: {}]   ;;  %s508_s3 = inlined_call_operand.vmem [shape: f32[20,1], index: 3, kind: output, shape index: {}]  }
   0x1   :  { %8 = sst [smem:[#allocation2]] %s507_s2 }
   0x2   :  { %9 = vsyncpa [#allocation4], 0 }
   0x3   :  { %11 = vsyncpa [#allocation4 + $0x1], 0  ;;  %s408_s14 = smov 0   ;;  %s410_s15 = smov 0  }
   0x4   :  { %s412_s16 = smov 0   ;;  %s414_s17 = smov 0  }
   0x5 LB: > { %s427_s2 = sadd.s32 4294967295, %s383_s17   ;;  %s430_s18 = sadd.s32 1, %s383_s17   ;;  %s383_s17 = sphi %s414_s17, %s515_s17   ;;  %s379_s16 = sphi %s412_s16, %s514_s16   ;;  %s375_s15 = sphi %s410_s15, %s513_s15   ;;  %s371_s14 = sphi %s408_s14, %s512_s14  }
   0x6   : > { %s21_s19 = ssub.s32 %s383_s17, %s430_s18  ;;  %s24_s20 = sadd.s32 1, %s379_s16 }
   0x7   : > { %p22_p0 = scmp.eq.s32.totalorder %s21_s19, 0  ;;  %p31_p1 = scmp.ne.s32.totalorder %s379_s16, %s375_s15 }
   0x8   : > { %p32_p2 = scmp.eq.s32.totalorder %s383_s17, 0  ;;  %p37_p3 = scmp.ne.s32.totalorder %s375_s15, %s371_s14 }
   0x9   : > { %s440_s21 = scalar_select %p22_p0, %s379_s16, %s24_s20  }
   0xa   : > { %p442_p4 = por %p32_p2, %p31_p1  ;;  %p38_p5 = scmp.eq.s32.totalorder %s427_s2, 0 }
   0xb   : > { %p285_p6 = scmp.lt.s32.totalorder %s383_s17, 3  ;;  %s135_s24 = sand.u32 1, %s379_s16  }
   0xc   : > { %p448_p7 = por %p38_p5, %p37_p3  ;;  %s272_s25 = sshll.u32 %s135_s24, 3 }
   0xd   : > { %s273_s26 = sshll.u32 %s383_s17, 3  ;;  %s139_s30 = scalar_lea.vmem [#allocation3], %s272_s25 }
   0xe   : > { %s143_s29 = scalar_lea.hbm %s505_s0, %s273_s26  ;;  %s147_s4 = sshll.u32 %s139_s30, 4  ;;  %s148_s4 = int_to_ptr.vmem [resolvable:$true] %s147_s4 }
   0xf   : > { %s145_s5 = sshll.u32 %s143_s29, 4  ;;  %p459_p8 = pnand %p285_p6, %p442_p4  ;;  %s146_s5 = int_to_ptr.hbm [resolvable:$true] %s145_s5 }
  0x10   : > { %p274_p9 = scmp.ge.s32.totalorder %s383_s17, 1  ;;  %p152_p10 = scmp.lt.s32.totalorder %s383_s17, 4 }
  0x11   : > { %s136_s7 = scalar_lea.sflag [#allocation4], %s135_s24  ;;  %s319_s8 = sshra.s32 %s146_s5, 4  ;;  %s320_s8 = int_to_ptr.hbm [resolvable:$true] %s319_s8 }
  0x12   : > { %s321_s9 = scalar_lea.hbm %s320_s8, 8  ;;  %p323_p12 = pneg %p459_p8 }
  0x13   : > { %p322_p11 = scmp.ne.s32.totalorder %s320_s8, %s321_s9  ;;  %s326_s12 = scalar_lea.hbm %s505_s0, 24 }
  0x14   : > { %p327_p1 = scmp.lt.s32.totalorder %s320_s8, %s505_s0  ;;  %p328_p2 = scmp.lt.s32.totalorder %s326_s12, %s321_s9 }
  0x15   : > { %p324_p13 = pnand %p323_p12, %p322_p11 }
  0x16   : > { %p329_p3 = por %p328_p2, %p327_p1 }
  0x17   : > { %p325_p0 = pneg %p324_p13 }
  0x19   : > { %p330_p4 = pnand %p329_p3, %p325_p0 }
  0x1b   : > { %333 = shalt.err (!%p330_p4)
}
  0x1c   : > { %284 = dma.hbm_to_vmem [thread:$0]  (!%p459_p8), %s146_s5, 128, %s148_s4, %s136_s7  }
  0x1d   : > { %p153_p5 = pnand %p274_p9, %p152_p10 }
  0x1e   : > { %s158_s19 = sand.u32 (!%p153_p5), 1, %s375_s15  }
  0x1f   : > { %156 = sbr.rel (%p153_p5) target bundleno = 161 (0xa1), region = 32  ;;  %s275_s20 = sshll.u32 (!%p153_p5), %s158_s19, 3 }
  0x20   : > { %s159_s22 = scalar_lea.sflag (!%p153_p5), [#allocation4], %s158_s19  ;;  %s162_s24 = scalar_lea.vmem (!%p153_p5), [#allocation3], %s275_s20 }
  0x24   : > { %366 = dma.done.wait (%p448_p7), %s159_s22, 128  }
  0x25   : > { %368 = vsyncadd (%p448_p7), %s159_s22, 4294967168  ;;  %v189_v0 = vld [vmem:[%s162_s24] sm:$0xff]  ;;  %vm195_vm0 = vcmask 392192   ;;  %p185_p6 = scmp.lt.s32.totalorder %s427_s2, 2  ;;  %s199_s17 = sld [smem:[#allocation2]]  ;;  %vm202_vm1 = vcmask 7168  }
  0x26   : > { %v318_v1 = vld [vmem:[%s506_s1] ss:$0 sm:$0xff] }
  0x27   : > { %v194_v2 = vmul.f32 %v318_v1, %v189_v0  ;;  %s517_s2 = smov (!%p185_p6, %s427_s2), 2 }
  0x28   : > { %s276_s27 = sshll.u32 %s517_s2, 3 }
  0x29   : > { %v196_v3 = vsel %vm195_vm0, %v194_v2, 0.0  ;;  %s188_s23 = scalar_lea.vmem %s508_s3, %s276_s27 }
  0x2a   : > { %197 = vadd.xlane.f32.xlu0 %v196_v3 }
  0x2b   : > { %v200_v4 = vstv %s199_s17 }
  0x9d   : > { %v198_v5 = vpop.xlane.xlu0 %197 }
  0x9e   : > { %v201_v6 = vadd.f32 %v200_v4, %v198_v5 }
  0xa0   : > { %203 = vst.msk [vmem:[%s188_s23] sm:$0xff] %vm202_vm1, %v201_v6 }
  0xa1 PF: > { %p14_p7 = scmp.ge.s32.totalorder %s430_s18, 5   ;;  %s512_s14 = smov %s375_s15 }
  0xa2   : > { %s513_s15 = smov %s379_s16  ;;  %s514_s16 = smov %s440_s21 }
  0xa3   : > { %s515_s17 = smov %s430_s18  ;;  %16 = sbr.rel (!%p14_p7) target bundleno = 5 (0x5), region = 72 }
  0xa8   :  { %223 = vsyncpa [#allocation4], 1 }
  0xa9   :  { %225 = vsyncpa [#allocation4 + $0x1], 1 }

</bundles_post_ra>
